<compile_context>
chip_gen: v7x
topology: tpu7x:2x2x1
jax: 0.10.0
libtpu: 0.0.40
codegen_flags: <defaults>
</compile_context>

<pallas_src>
import math
from functools import partial

import jax
import jax.numpy as jnp
from jax import lax
from jax.experimental import pallas as pl
from jax.experimental.pallas import tpu as pltpu

_MB = 1024 * 1024


def _down_sampling_kernel(b_ref, x_ref, m_ref, s_ref, o_ref):
    """One (image, grouped-output-row tile) grid step.

    b_ref: SMEM (OC,)              bias (f32)
    x_ref: VMEM (1, C, TR, L)      input tile; L = g*k*W lanes, TR grouped rows
    m_ref: VMEM (OC, C, 1, L)      lane-periodic weight mask
    s_ref: VMEM (L, g*OW)          0/1 block-diagonal compaction matrix (f32)
    o_ref: VMEM (1, OC, TR, g*OW)  output tile, lane-dense grouped NCHW layout
    """
    OC, C = m_ref.shape[0], m_ref.shape[1]
    # c-outer / oc-inner: every loaded x vreg feeds all OC mask-multiplies
    # back-to-back, cutting x vector-loads ~OC-fold.
    accs = [None] * OC
    for c in range(C):                        # C == 3, unrolled at trace time
        xc = x_ref[0, c]                      # (TR, L)
        for oc in range(OC):                  # OC == 3, unrolled
            prod = (xc * m_ref[oc, c]).astype(jnp.float32)   # (TR,L)*(1,L)
            accs[oc] = prod if accs[oc] is None else accs[oc] + prod
    s = s_ref[...]                            # (L, g*OW), shared across oc
    for oc in range(OC):
        # Fold kh and kw groups in one cheap MXU matmul: (TR, L) @ (L, g*OW).
        out = jnp.dot(accs[oc], s, preferred_element_type=jnp.float32) + b_ref[oc]
        o_ref[0, oc, :, :] = out.astype(o_ref.dtype)


def _round_up(a, b):
    return -(-a // b) * b


def _pick_row_group(OH, OW, k, Wv):
    """Number of output rows packed into the lane dimension.

    Lane-dense stores want g*OW >= 128 when OW < 128.  g must divide OH; keep the
    (g*k*W, g*OW) compaction matrix small."""
    target = max(1, -(-128 // OW))            # ceil(128 / OW)
    best = 1
    for g in range(1, min(OH, target) + 1):
        if OH % g:
            continue
        if (g * k * Wv) * (g * OW) * 4 > 4 * _MB:   # scol is shipped as f32
            break
        best = g
    return best


def _vmem_bytes(tr, C, OC, L, OWg, itemsize):
    """Honest per-step VMEM estimate: sublane (8) / lane (128) padding, double
    buffering of the pipelined x/out blocks AND of the constant-index wmask/scol
    blocks, plus the f32 running accumulators and a little slack."""
    trp = _round_up(tr, 8)
    lp = _round_up(L, 128)
    owp = _round_up(OWg, 128)
    x_blk = 2 * C * trp * lp * itemsize            # double-buffered input tile
    o_blk = 2 * OC * trp * owp * itemsize          # double-buffered output tile
    wmask = 2 * OC * C * 8 * lp * itemsize         # (OC,C,1,L): 1 sublane pads to 8
    scol = 2 * _round_up(L, 8) * owp * 4           # f32 compaction matrix
    accs = OC * trp * lp * 4                       # f32 accumulators
    return x_blk + o_blk + wmask + scol + accs + 512 * 1024


def _pick_row_tile(OH_g, N, C, OC, L, OWg, itemsize, budget):
    """Grouped-output rows per grid step.  Must divide OH_g and be a multiple of 8
    (or equal OH_g).  Pick the largest tile that fits the budget, but keep enough
    grid steps for software pipelining and both v7x TensorCores."""
    cands = [t for t in range(8, OH_g, 8) if OH_g % t == 0]
    cands.append(OH_g)
    fitting = [t for t in cands if _vmem_bytes(t, C, OC, L, OWg, itemsize) <= budget]
    if not fitting:
        return min(cands)          # smallest legal tile even if over budget
    min_steps = max(2, -(-8 // max(N, 1)))
    # Prefer >= min_steps row tiles (pipelining / 2 TCs), then the biggest tile.
    return max(fitting, key=lambda t: (min(OH_g // t, min_steps), t))


def _vmem_budget_and_limit():
    """(total VMEM budget for the tile plan, optional vmem_limit_bytes).

    Conservative on v5e / unknown parts (stay under the default scoped limit);
    larger on v6e (128 MiB physical, HBM-bound -> big tiles pay off); capped well
    under v7x's 64 MiB-per-TC physical VMEM."""
    try:
        kind = jax.devices()[0].device_kind.lower()
    except Exception:
        kind = ""
    if "v6" in kind:
        return 80 * _MB, 100 * _MB
    if "v5" in kind:
        return 12 * _MB, None          # v5e: 16 MiB default scoped VMEM
    if "7" in kind:
        return 40 * _MB, 48 * _MB      # v7x: 64 MiB physical per TensorCore
    return 12 * _MB, None              # unknown: safest default


@partial(jax.jit, static_argnums=(3,))
def down_sampling_forward(x, weight, bias, filter_size):
    """x: (N, C, H, W); weight: (OC, C, k, k); bias: (OC,). Returns (N, OC, OH, OW)."""
    N, C, H, W = x.shape
    k = filter_size
    OC = weight.shape[0]
    OH, OW = H // k, W // k
    if (H % k) or (W % k):
        # TODO(synk): fold the VALID-crop tail into the compaction matrix / index_map
        # to avoid this extra XLA HBM copy; the fast path assumes H % k == W % k == 0.
        x = x[:, :, : OH * k, : OW * k]
    Wv = OW * k
    dt = x.dtype
    itemsize = dt.itemsize

    g = _pick_row_group(OH, OW, k, Wv)
    OH_g, OWg, L = OH // g, g * OW, g * k * Wv

    budget, vmem_limit = _vmem_budget_and_limit()
    TR = _pick_row_tile(OH_g, N, C, OC, L, OWg, itemsize, budget)
    grid = (N, OH_g // TR)

    # FREE view (contiguous-axis split/merge only):
    #   x_g[n, c, R, j*k*Wv + kh*Wv + w] == x[n, c, (R*g + j)*k + kh, w]
    x_g = x.reshape(N, C, OH_g, L)

    # Lane-periodic weight mask: m[oc, c, 0, j*k*Wv + kh*Wv + w] = weight[oc, c, kh, w % k].
    wmask = jnp.tile(
        jnp.tile(weight.astype(dt), (1, 1, 1, OW)).reshape(OC, C, 1, k * Wv),
        (1, 1, 1, g))

    # Block-diagonal 0/1 compaction: column (j, kh, w) feeds output column (j, w // k).
    col = jnp.arange(L)
    ocol = jnp.arange(OWg)
    scol = (((col // (k * Wv))[:, None] == (ocol // OW)[None, :])
            & (((col % Wv) // k)[:, None] == (ocol % OW)[None, :])).astype(jnp.float32)

    out_g = pl.pallas_call(
        _down_sampling_kernel,
        grid=grid,
        in_specs=[
            pl.BlockSpec(memory_space=pltpu.MemorySpace.SMEM),               # bias
            pl.BlockSpec((1, C, TR, L), lambda n, r: (n, 0, r, 0)),          # x tile
            pl.BlockSpec((OC, C, 1, L), lambda n, r: (0, 0, 0, 0)),          # weight mask
            pl.BlockSpec((L, OWg), lambda n, r: (0, 0)),                     # compaction
        ],
        out_specs=pl.BlockSpec((1, OC, TR, OWg), lambda n, r: (n, 0, r, 0)),
        out_shape=jax.ShapeDtypeStruct((N, OC, OH_g, OWg), dt),
        compiler_params=pltpu.CompilerParams(
            dimension_semantics=("parallel", "parallel"),
            vmem_limit_bytes=vmem_limit),
    )(bias.astype(jnp.float32), x_g, wmask, scol)

    # FREE reshape back to NCHW: out_g[n, oc, R, j*OW + ow] == out[n, oc, R*g + j, ow].
    return out_g.reshape(N, OC, OH, OW)


def _reference_conv(x, weight, bias, k):
    y = lax.conv_general_dilated(
        x, weight, window_strides=(k, k), padding="VALID",
        dimension_numbers=("NCHW", "OIHW", "NCHW"))
    return y + bias.reshape(1, -1, 1, 1)


if __name__ == "__main__":
    def run_case(from_sz, to_sz, N):
        k = from_sz // to_sz
        C = OC = 3
        key = jax.random.fold_in(jax.random.PRNGKey(0), from_sz)
        kx, kw, kb = jax.random.split(key, 3)
        # Deterministic params mimicking PyTorch Conv2d defaults (uniform +-1/sqrt(fan_in)).
        fan_in = C * k * k
        bound = 1.0 / math.sqrt(fan_in)
        weight = jax.random.uniform(kw, (OC, C, k, k), jnp.float32, -bound, bound)
        bias = jax.random.uniform(kb, (OC,), jnp.float32, -bound, bound)
        x = jax.random.normal(kx, (N, C, from_sz, from_sz), jnp.float32)

        out = jax.block_until_ready(down_sampling_forward(x, weight, bias, k))
        ref = _reference_conv(x, weight, bias, k)
        assert out.shape == (N, OC, from_sz // k, from_sz // k), out.shape
        assert jnp.allclose(out, ref, atol=1e-4, rtol=1e-4), (
            f"mismatch vs reference conv for {from_sz}->{to_sz}")

    # Module config: down_sampling(from_sz=16, to_sz=4) -> Conv2d(3, 3, 4, stride=4).
    run_case(16, 4, N=2)
    # Second small shape exercising row-grouping with more than one grouped row.
    run_case(48, 12, N=2)

    print("KERNEL_OK")
</pallas_src>

<mosaic_0001>
module attributes {stable_mosaic.version = 11 : i64} {
  func.func @_down_sampling_kernel(%arg0: i32, %arg1: i32, %arg2: memref<3xf32, #tpu.memory_space<smem>>, %arg3: memref<1x3x1x256xf32, #tpu.memory_space<vmem>>, %arg4: memref<3x3x1x256xf32, #tpu.memory_space<vmem>>, %arg5: memref<256x16xf32, #tpu.memory_space<vmem>>, %arg6: memref<1x3x1x16xf32, #tpu.memory_space<vmem>>) attributes {dimension_semantics = [#tpu.dimension_semantics<parallel>, #tpu.dimension_semantics<parallel>], iteration_bounds = array<i64: 2, 1>, scalar_prefetch = 0 : i64, scratch_operands = 0 : i64, tpu.core_type = #tpu.core_type<tc>, window_params = [{transform_indices = @transform_0, window_bounds = array<i64: 3>}, {transform_indices = @transform_1, window_bounds = array<i64: 1, 3, 1, 256>}, {pipeline_mode = #tpu.pipeline_mode<synchronous>, transform_indices = @transform_2, window_bounds = array<i64: 3, 3, 1, 256>}, {pipeline_mode = #tpu.pipeline_mode<synchronous>, transform_indices = @transform_3, window_bounds = array<i64: 256, 16>}, {transform_indices = @transform_4, window_bounds = array<i64: 1, 3, 1, 16>}]} {
    %c0 = arith.constant 0 : index
    %c0_0 = arith.constant 0 : index
    %c0_1 = arith.constant 0 : index
    %c0_2 = arith.constant 0 : index
    %0 = vector.load %arg3[%c0, %c0_0, %c0_1, %c0_2] : memref<1x3x1x256xf32, #tpu.memory_space<vmem>>, vector<1x1x1x256xf32>
    %1 = vector.shape_cast %0 : vector<1x1x1x256xf32> to vector<1x256xf32>
    %c0_3 = arith.constant 0 : index
    %c0_4 = arith.constant 0 : index
    %c0_5 = arith.constant 0 : index
    %c0_6 = arith.constant 0 : index
    %2 = vector.load %arg4[%c0_3, %c0_4, %c0_5, %c0_6] : memref<3x3x1x256xf32, #tpu.memory_space<vmem>>, vector<1x1x1x256xf32>
    %3 = vector.shape_cast %2 : vector<1x1x1x256xf32> to vector<1x256xf32>
    %4 = arith.mulf %1, %3 : vector<1x256xf32>
    %c1 = arith.constant 1 : index
    %c0_7 = arith.constant 0 : index
    %c0_8 = arith.constant 0 : index
    %c0_9 = arith.constant 0 : index
    %5 = vector.load %arg4[%c1, %c0_7, %c0_8, %c0_9] : memref<3x3x1x256xf32, #tpu.memory_space<vmem>>, vector<1x1x1x256xf32>
    %6 = vector.shape_cast %5 : vector<1x1x1x256xf32> to vector<1x256xf32>
    %7 = arith.mulf %1, %6 : vector<1x256xf32>
    %c2 = arith.constant 2 : index
    %c0_10 = arith.constant 0 : index
    %c0_11 = arith.constant 0 : index
    %c0_12 = arith.constant 0 : index
    %8 = vector.load %arg4[%c2, %c0_10, %c0_11, %c0_12] : memref<3x3x1x256xf32, #tpu.memory_space<vmem>>, vector<1x1x1x256xf32>
    %9 = vector.shape_cast %8 : vector<1x1x1x256xf32> to vector<1x256xf32>
    %10 = arith.mulf %1, %9 : vector<1x256xf32>
    %c0_13 = arith.constant 0 : index
    %c1_14 = arith.constant 1 : index
    %c0_15 = arith.constant 0 : index
    %c0_16 = arith.constant 0 : index
    %11 = vector.load %arg3[%c0_13, %c1_14, %c0_15, %c0_16] : memref<1x3x1x256xf32, #tpu.memory_space<vmem>>, vector<1x1x1x256xf32>
    %12 = vector.shape_cast %11 : vector<1x1x1x256xf32> to vector<1x256xf32>
    %c0_17 = arith.constant 0 : index
    %c1_18 = arith.constant 1 : index
    %c0_19 = arith.constant 0 : index
    %c0_20 = arith.constant 0 : index
    %13 = vector.load %arg4[%c0_17, %c1_18, %c0_19, %c0_20] : memref<3x3x1x256xf32, #tpu.memory_space<vmem>>, vector<1x1x1x256xf32>
    %14 = vector.shape_cast %13 : vector<1x1x1x256xf32> to vector<1x256xf32>
    %15 = arith.mulf %12, %14 : vector<1x256xf32>
    %16 = arith.addf %4, %15 : vector<1x256xf32>
    %c1_21 = arith.constant 1 : index
    %c1_22 = arith.constant 1 : index
    %c0_23 = arith.constant 0 : index
    %c0_24 = arith.constant 0 : index
    %17 = vector.load %arg4[%c1_21, %c1_22, %c0_23, %c0_24] : memref<3x3x1x256xf32, #tpu.memory_space<vmem>>, vector<1x1x1x256xf32>
    %18 = vector.shape_cast %17 : vector<1x1x1x256xf32> to vector<1x256xf32>
    %19 = arith.mulf %12, %18 : vector<1x256xf32>
    %20 = arith.addf %7, %19 : vector<1x256xf32>
    %c2_25 = arith.constant 2 : index
    %c1_26 = arith.constant 1 : index
    %c0_27 = arith.constant 0 : index
    %c0_28 = arith.constant 0 : index
    %21 = vector.load %arg4[%c2_25, %c1_26, %c0_27, %c0_28] : memref<3x3x1x256xf32, #tpu.memory_space<vmem>>, vector<1x1x1x256xf32>
    %22 = vector.shape_cast %21 : vector<1x1x1x256xf32> to vector<1x256xf32>
    %23 = arith.mulf %12, %22 : vector<1x256xf32>
    %24 = arith.addf %10, %23 : vector<1x256xf32>
    %c0_29 = arith.constant 0 : index
    %c2_30 = arith.constant 2 : index
    %c0_31 = arith.constant 0 : index
    %c0_32 = arith.constant 0 : index
    %25 = vector.load %arg3[%c0_29, %c2_30, %c0_31, %c0_32] : memref<1x3x1x256xf32, #tpu.memory_space<vmem>>, vector<1x1x1x256xf32>
    %26 = vector.shape_cast %25 : vector<1x1x1x256xf32> to vector<1x256xf32>
    %c0_33 = arith.constant 0 : index
    %c2_34 = arith.constant 2 : index
    %c0_35 = arith.constant 0 : index
    %c0_36 = arith.constant 0 : index
    %27 = vector.load %arg4[%c0_33, %c2_34, %c0_35, %c0_36] : memref<3x3x1x256xf32, #tpu.memory_space<vmem>>, vector<1x1x1x256xf32>
    %28 = vector.shape_cast %27 : vector<1x1x1x256xf32> to vector<1x256xf32>
    %29 = arith.mulf %26, %28 : vector<1x256xf32>
    %30 = arith.addf %16, %29 : vector<1x256xf32>
    %c1_37 = arith.constant 1 : index
    %c2_38 = arith.constant 2 : index
    %c0_39 = arith.constant 0 : index
    %c0_40 = arith.constant 0 : index
    %31 = vector.load %arg4[%c1_37, %c2_38, %c0_39, %c0_40] : memref<3x3x1x256xf32, #tpu.memory_space<vmem>>, vector<1x1x1x256xf32>
    %32 = vector.shape_cast %31 : vector<1x1x1x256xf32> to vector<1x256xf32>
    %33 = arith.mulf %26, %32 : vector<1x256xf32>
    %34 = arith.addf %20, %33 : vector<1x256xf32>
    %c2_41 = arith.constant 2 : index
    %c2_42 = arith.constant 2 : index
    %c0_43 = arith.constant 0 : index
    %c0_44 = arith.constant 0 : index
    %35 = vector.load %arg4[%c2_41, %c2_42, %c0_43, %c0_44] : memref<3x3x1x256xf32, #tpu.memory_space<vmem>>, vector<1x1x1x256xf32>
    %36 = vector.shape_cast %35 : vector<1x1x1x256xf32> to vector<1x256xf32>
    %37 = arith.mulf %26, %36 : vector<1x256xf32>
    %38 = arith.addf %24, %37 : vector<1x256xf32>
    %c0_45 = arith.constant 0 : index
    %c0_46 = arith.constant 0 : index
    %39 = vector.load %arg5[%c0_45, %c0_46] : memref<256x16xf32, #tpu.memory_space<vmem>>, vector<256x16xf32>
    %cst = arith.constant dense<0.000000e+00> : vector<1x16xf32>
    %40 = tpu.matmul %30, %39, %cst {dimension_numbers = #tpu.dot_dimension_numbers<[1], [0], [0], [1], [0, 0, 1, 1], [], []>} : vector<1x256xf32>, vector<256x16xf32>, vector<1x16xf32> -> vector<1x16xf32>
    %c0_47 = arith.constant 0 : index
    %41 = memref.load %arg2[%c0_47] : memref<3xf32, #tpu.memory_space<smem>>
    %42 = vector.broadcast %41 : f32 to vector<1x16xf32>
    %43 = arith.addf %40, %42 : vector<1x16xf32>
    %c0_48 = arith.constant 0 : index
    %c0_49 = arith.constant 0 : index
    %c0_50 = arith.constant 0 : index
    %c0_51 = arith.constant 0 : index
    %44 = vector.load %arg6[%c0_48, %c0_49, %c0_50, %c0_51] : memref<1x3x1x16xf32, #tpu.memory_space<vmem>>, vector<1x1x1x16xf32>
    %45 = vector.shape_cast %44 : vector<1x1x1x16xf32> to vector<1x16xf32>
    %46 = vector.shape_cast %43 : vector<1x16xf32> to vector<1x1x1x16xf32>
    tpu.vector_store %arg6[%c0_48, %c0_49, %c0_50, %c0_51], %46 {strides = array<i32>} : memref<1x3x1x16xf32, #tpu.memory_space<vmem>>, vector<1x1x1x16xf32>,
    %cst_52 = arith.constant dense<0.000000e+00> : vector<1x16xf32>
    %47 = tpu.matmul %34, %39, %cst_52 {dimension_numbers = #tpu.dot_dimension_numbers<[1], [0], [0], [1], [0, 0, 1, 1], [], []>} : vector<1x256xf32>, vector<256x16xf32>, vector<1x16xf32> -> vector<1x16xf32>
    %c1_53 = arith.constant 1 : index
    %48 = memref.load %arg2[%c1_53] : memref<3xf32, #tpu.memory_space<smem>>
    %49 = vector.broadcast %48 : f32 to vector<1x16xf32>
    %50 = arith.addf %47, %49 : vector<1x16xf32>
    %c0_54 = arith.constant 0 : index
    %c1_55 = arith.constant 1 : index
    %c0_56 = arith.constant 0 : index
    %c0_57 = arith.constant 0 : index
    %51 = vector.load %arg6[%c0_54, %c1_55, %c0_56, %c0_57] : memref<1x3x1x16xf32, #tpu.memory_space<vmem>>, vector<1x1x1x16xf32>
    %52 = vector.shape_cast %51 : vector<1x1x1x16xf32> to vector<1x16xf32>
    %53 = vector.shape_cast %50 : vector<1x16xf32> to vector<1x1x1x16xf32>
    tpu.vector_store %arg6[%c0_54, %c1_55, %c0_56, %c0_57], %53 {strides = array<i32>} : memref<1x3x1x16xf32, #tpu.memory_space<vmem>>, vector<1x1x1x16xf32>,
    %cst_58 = arith.constant dense<0.000000e+00> : vector<1x16xf32>
    %54 = tpu.matmul %38, %39, %cst_58 {dimension_numbers = #tpu.dot_dimension_numbers<[1], [0], [0], [1], [0, 0, 1, 1], [], []>} : vector<1x256xf32>, vector<256x16xf32>, vector<1x16xf32> -> vector<1x16xf32>
    %c2_59 = arith.constant 2 : index
    %55 = memref.load %arg2[%c2_59] : memref<3xf32, #tpu.memory_space<smem>>
    %56 = vector.broadcast %55 : f32 to vector<1x16xf32>
    %57 = arith.addf %54, %56 : vector<1x16xf32>
    %c0_60 = arith.constant 0 : index
    %c2_61 = arith.constant 2 : index
    %c0_62 = arith.constant 0 : index
    %c0_63 = arith.constant 0 : index
    %58 = vector.load %arg6[%c0_60, %c2_61, %c0_62, %c0_63] : memref<1x3x1x16xf32, #tpu.memory_space<vmem>>, vector<1x1x1x16xf32>
    %59 = vector.shape_cast %58 : vector<1x1x1x16xf32> to vector<1x16xf32>
    %60 = vector.shape_cast %57 : vector<1x16xf32> to vector<1x1x1x16xf32>
    tpu.vector_store %arg6[%c0_60, %c2_61, %c0_62, %c0_63], %60 {strides = array<i32>} : memref<1x3x1x16xf32, #tpu.memory_space<vmem>>, vector<1x1x1x16xf32>,
    return
  }
  func.func @transform_0(%arg0: i32, %arg1: i32) -> i32 {
    %c0_i32 = arith.constant 0 : i32
    %c0_i32_0 = arith.constant 0 : i32
    return %c0_i32 : i32
  }
  func.func @transform_1(%arg0: i32, %arg1: i32) -> (i32, i32, i32, i32) {
    %c0_i32 = arith.constant 0 : i32
    %c0_i32_0 = arith.constant 0 : i32
    %c0_i32_1 = arith.constant 0 : i32
    return %arg0, %c0_i32, %arg1, %c0_i32_0 : i32, i32, i32, i32
  }
  func.func @transform_2(%arg0: i32, %arg1: i32) -> (i32, i32, i32, i32) {
    %c0_i32 = arith.constant 0 : i32
    %c0_i32_0 = arith.constant 0 : i32
    %c0_i32_1 = arith.constant 0 : i32
    %c0_i32_2 = arith.constant 0 : i32
    %c0_i32_3 = arith.constant 0 : i32
    return %c0_i32, %c0_i32_0, %c0_i32_1, %c0_i32_2 : i32, i32, i32, i32
  }
  func.func @transform_3(%arg0: i32, %arg1: i32) -> (i32, i32) {
    %c0_i32 = arith.constant 0 : i32
    %c0_i32_0 = arith.constant 0 : i32
    %c0_i32_1 = arith.constant 0 : i32
    return %c0_i32, %c0_i32_0 : i32, i32
  }
  func.func @transform_4(%arg0: i32, %arg1: i32) -> (i32, i32, i32, i32) {
    %c0_i32 = arith.constant 0 : i32
    %c0_i32_0 = arith.constant 0 : i32
    %c0_i32_1 = arith.constant 0 : i32
    return %arg0, %c0_i32, %arg1, %c0_i32_0 : i32, i32, i32, i32
  }
}

</mosaic_0001>

<bundles_post_ra>
// kernel: down_sampling_forward.1
= control target key start
LH: loop header
LB: loop body
LE: loop exit
PB: predicated region body
PF: predicated region fallthrough
CT: control target
= control target key end

     0   :  { %9 = vsyncpa [#allocation3], 0  ;;  %s985_s15 = smov 0   ;;  %s987_s16 = smov 0   ;;  %s1225_s0 = inlined_call_operand.vmem [shape: f32[3], index: 0, kind: input, shape index: {}]   ;;  %s1226_s1 = inlined_call_operand.vmem [shape: f32[2,3,1,256], index: 1, kind: input, shape index: {}]   ;;  %s1227_s2 = inlined_call_operand.vmem [shape: f32[3,3,1,256], index: 2, kind: input, shape index: {}]   ;;  %s1228_s3 = inlined_call_operand.vmem [shape: f32[256,16], index: 3, kind: input, shape index: {}]   ;;  %s1229_s4 = inlined_call_operand.vmem [shape: f32[2,3,1,16], index: 4, kind: output, shape index: {}]  }
   0x1   :  { %s989_s17 = smov 0  }
   0x2 LB: > { %s655_s18 = sadd.s32 4294967295, %s957_s17   ;;  %s27_s19 = sadd.s32 1, %s953_s16  ;;  %s957_s17 = sphi %s989_s17, %s15_s17   ;;  %s953_s16 = sphi %s987_s16, %s1233_s16   ;;  %s949_s15 = sphi %s985_s15, %s1232_s15  }
   0x3   : > { %p29_p0 = scmp.ge.s32.totalorder %s27_s19, 2  ;;  %p657_p1 = scmp.ge.s32.totalorder %s957_s17, 1 }
   0x4   : > { %p151_p2 = scmp.lt.s32.totalorder %s957_s17, 3  ;;  %p1010_p4 = scmp.eq.s32.totalorder %s655_s18, 0 }
   0x5   : > { %s1235_s19 = smov (%p29_p0, %s27_s19), 0  ;;  %s164_s24 = sshll.u32 %s1225_s0, 4  ;;  %s165_s24 = int_to_ptr.vmem [resolvable:$true] %s164_s24 }
   0x6   : > { %p1006_p3 = pnand %p657_p1, %p151_p2  ;;  %s916_s25 = scalar_lea.vmem %s165_s24, 16 }
   0x7   : > { %p917_p7 = scmp.ne.s32.totalorder %s165_s24, %s916_s25  ;;  %p924_p11 = scmp.lt.s32.totalorder %s165_s24, %s165_s24 }
   0x8   : > { %p885_p5 = pneg %p1006_p3  ;;  %p925_p12 = scmp.lt.s32.totalorder %s916_s25, %s916_s25 }
   0xa   : > { %p886_p6 = pnand %p1010_p4, %p885_p5  ;;  %p926_p13 = por %p925_p12, %p924_p11 }
   0xc   : > { %p918_p8 = pneg %p886_p6 }
   0xe   : > { %p919_p9 = pnand %p918_p8, %p917_p7 }
  0x10   : > { %p920_p10 = pneg %p919_p9 }
  0x12   : > { %p927_p0 = pnand %p926_p13, %p920_p10 }
  0x14   : > { %930 = shalt.err (!%p927_p0)
}
  0x15   : > { %s959_s26 = smov [#allocation2]   ;;  %194 = sbr.rel (%p1006_p3) target bundleno = 316 (0x13c), region = 36 }
  0x16   : > { %888 = dma.vmem_to_smem (!%p886_p6), %s165_s24, 16, %s959_s26, [#allocation3]  }
  0x1c   : > { %944 = dma.done.wait (%p1010_p4), [#allocation3], 16  }
  0x1d   : > { %946 = vsyncadd (%p1010_p4), [#allocation3], 4294967280 }
  0x1e   : > { %200 = sfence }
  0x1f   : > { %v294_v0 = vld [vmem:[%s1228_s3 + $0x80] sm:$0xff]  ;;  %v295_v1 = vld [vmem:[%s1228_s3 + $0x88] sm:$0xff]  ;;  %p226_p1 = scmp.lt.s32.totalorder %s949_s15, 1  ;;  %v296_v5 = vld [vmem:[%s1228_s3 + $0x90] sm:$0xff]  ;;  %v313_v19 = vlaneseq  ;;  %s672_s26 = sld [smem:[#allocation2 + $0x1]]  ;;  %vm393_vm0 = vcmask 122880  }
  0x20   : > { %v278_v2 = vld [vmem:[%s1228_s3] sm:$0xff]  ;;  %v1037_v3 = vpack.c.bf16 %v295_v1, %v294_v0  ;;  %v279_v4 = vld [vmem:[%s1228_s3 + $0x8] sm:$0xff]  ;;  %v297_v6 = vld [vmem:[%s1228_s3 + $0x98] sm:$0xff]  ;;  %s674_s5 = sld [smem:[#allocation2 + $0x2]] }
  0x21   : > { %v1048_v7 = vpack.c.bf16 %v279_v4, %v278_v2  ;;  %v1050_v8 = vpack.c.bf16 %v297_v6, %v296_v5  ;;  %v280_v9 = vld [vmem:[%s1228_s3 + $0x10] sm:$0xff]  ;;  %v281_v10 = vld [vmem:[%s1228_s3 + $0x18] sm:$0xff]  ;;  %v298_v11 = vld [vmem:[%s1228_s3 + $0xa0] sm:$0xff]  ;;  %s1237_s15 = smov (!%p226_p1, %s949_s15), 1  ;;  %v1113_v27 = vshrl.u32 %v313_v19, 7 }
  0x22   : > { %784 = vmatprep.subr.bf16.mxu0 %v1037_v3  ;;  %v299_v12 = vld [vmem:[%s1228_s3 + $0xa8] sm:$0xff]  ;;  %816 = vmatprep.subr.bf16.mxu1 %v1037_v3  ;;  %v1070_v13 = vpack.c.bf16 %v281_v10, %v280_v9  ;;  %s879_s25 = smul.u32 6, %s1237_s15  ;;  %v282_v15 = vld [vmem:[%s1228_s3 + $0x20] sm:$0xff]  ;;  %v300_v17 = vld [vmem:[%s1228_s3 + $0xb0] sm:$0xff] }
  0x23   : > { %786 = vmatpush3.bf16.msra.mxu0 %v1048_v7  ;;  %818 = vmatpush3.bf16.msra.mxu1 %v1048_v7  ;;  %v1075_v14 = vpack.c.bf16 %v299_v12, %v298_v11  ;;  %v283_v16 = vld [vmem:[%s1228_s3 + $0x28] sm:$0xff]  ;;  %v301_v18 = vld [vmem:[%s1228_s3 + $0xb8] sm:$0xff]  ;;  %v284_v22 = vld [vmem:[%s1228_s3 + $0x30] sm:$0xff]  ;;  %v319_v47 = vsub.s32 1, %v1113_v27  ;;  %v315_v19 = vsub.s32 0, %v1113_v27  ;;  %s880_s27 = smul.u32 3, %s1237_s15 }
  0x24   : > { %788 = vmatprep.subr.bf16.mxu0 %v1050_v8  ;;  %820 = vmatprep.subr.bf16.mxu1 %v1050_v8  ;;  %s233_s10 = scalar_lea.vmem %s1226_s1, %s879_s25  ;;  %v1094_v20 = vpack.c.bf16 %v283_v16, %v282_v15  ;;  %v1098_v21 = vpack.c.bf16 %v301_v18, %v300_v17  ;;  %v285_v23 = vld [vmem:[%s1228_s3 + $0x38] sm:$0xff]  ;;  %v302_v24 = vld [vmem:[%s1228_s3 + $0xc0] sm:$0xff]  ;;  %v303_v25 = vld [vmem:[%s1228_s3 + $0xc8] sm:$0xff]  ;;  %s310_s25 = sld [smem:[#allocation2]] }
  0x25   : > { %v241_v26 = vld [vmem:[%s233_s10] sm:$0x3]  ;;  %v664_v30 = vld [vmem:[%s233_s10 + $0x2] sm:$0x3]  ;;  %v1125_v32 = vpack.c.bf16 %v285_v23, %v284_v22  ;;  %v668_v35 = vld [vmem:[%s233_s10 + $0x4] sm:$0x3]  ;;  %v1135_v38 = vpack.c.bf16 %v303_v25, %v302_v24  ;;  %s240_s30 = scalar_lea.vmem %s1229_s4, %s880_s27 }
  0x26   : > { %v286_v28 = vld [vmem:[%s1228_s3 + $0x40] sm:$0xff]  ;;  %v287_v39 = vld [vmem:[%s1228_s3 + $0x48] sm:$0xff]  ;;  %v304_v44 = vld [vmem:[%s1228_s3 + $0xd0] sm:$0xff] }
  0x27   : > { %790 = vmatpush3.bf16.msra.mxu0 %v1070_v13  ;;  %822 = vmatpush3.bf16.msra.mxu1 %v1070_v13  ;;  %v242_v29 = vld [vmem:[%s1227_s2] sm:$0x3]  ;;  %v665_v31 = vld [vmem:[%s1227_s2 + $0x2] sm:$0x3]  ;;  %v669_v36 = vld [vmem:[%s1227_s2 + $0x4] sm:$0x3]  ;;  %v1155_v50 = vpack.c.bf16 %v287_v39, %v286_v28 }
  0x28   : > { %792 = vmatprep.subr.bf16.mxu0 %v1075_v14  ;;  %824 = vmatprep.subr.bf16.mxu1 %v1075_v14  ;;  %v243_v33 = vmul.f32 %v242_v29, %v241_v26  ;;  %v254_v34 = vmul.f32 %v665_v31, %v664_v30  ;;  %v662_v37 = vld [vmem:[%s1227_s2 + $0x6] sm:$0x3]  ;;  %v268_v40 = vmul.f32 %v669_v36, %v668_v35  ;;  %v666_v42 = vld [vmem:[%s1227_s2 + $0x8] sm:$0x3]  ;;  %v670_v43 = vld [vmem:[%s1227_s2 + $0xa] sm:$0x3] }
  0x29   : > { %v246_v41 = vmul.f32 %v662_v37, %v241_v26  ;;  %v305_v45 = vld [vmem:[%s1228_s3 + $0xd8] sm:$0xff]  ;;  %v258_v48 = vmul.f32 %v666_v42, %v664_v30  ;;  %v272_v49 = vmul.f32 %v670_v43, %v668_v35  ;;  %v288_v54 = vld [vmem:[%s1228_s3 + $0x50] sm:$0xff]  ;;  %v306_v56 = vld [vmem:[%s1228_s3 + $0xe0] sm:$0xff] }
  0x2a   : > { %v255_v46 = vadd.f32 %v254_v34, %v243_v33  ;;  %v803_v53 = vpack.c.bf16 %v305_v45, %v304_v44  ;;  %v289_v55 = vld [vmem:[%s1228_s3 + $0x58] sm:$0xff]  ;;  %v307_v57 = vld [vmem:[%s1228_s3 + $0xe8] sm:$0xff]  ;;  %v290_v1 = vld [vmem:[%s1228_s3 + $0x60] sm:$0xff] }
  0x2b   : > { %794 = vmatpush3.bf16.msra.mxu0 %v1094_v20  ;;  %826 = vmatpush3.bf16.msra.mxu1 %v1094_v20  ;;  %v259_v52 = vadd.f32 %v258_v48, %v246_v41  ;;  %v663_v60 = vld [vmem:[%s1227_s2 + $0xc] sm:$0x3]  ;;  %v667_v61 = vld [vmem:[%s1227_s2 + $0xe] sm:$0x3]  ;;  %v805_v62 = vpack.c.bf16 %v289_v55, %v288_v54  ;;  %v807_v0 = vpack.c.bf16 %v307_v57, %v306_v56  ;;  %v308_v6 = vld [vmem:[%s1228_s3 + $0xf0] sm:$0xff] }
  0x2c   : > { %796 = vmatprep.subr.bf16.mxu0 %v1098_v21  ;;  %828 = vmatprep.subr.bf16.mxu1 %v1098_v21  ;;  %v269_v51 = vadd.f32 %v268_v40, %v255_v46  ;;  %v291_v2 = vld [vmem:[%s1228_s3 + $0x68] sm:$0xff]  ;;  %v249_v4 = vmul.f32 %v663_v60, %v241_v26  ;;  %v262_v5 = vmul.f32 %v667_v61, %v664_v30  ;;  %v309_v9 = vld [vmem:[%s1228_s3 + $0xf8] sm:$0xff]  ;;  %v671_v10 = vld [vmem:[%s1227_s2 + $0x10] sm:$0x3] }
  0x2d   : > { %v273_v59 = vadd.f32 %v272_v49, %v259_v52  ;;  %v809_v11 = vpack.c.bf16 %v291_v2, %v290_v1  ;;  %v811_v12 = vpack.c.bf16 %v309_v9, %v308_v6  ;;  %v292_v15 = vld [vmem:[%s1228_s3 + $0x70] sm:$0xff]  ;;  %v293_v16 = vld [vmem:[%s1228_s3 + $0x78] sm:$0xff]  ;;  %v276_v18 = vmul.f32 %v671_v10, %v668_v35 }
  0x2e   : > { %v320_v58 = vrot.slane %v269_v51, %v319_v47  ;;  %v263_v17 = vadd.f32 %v262_v5, %v249_v4  ;;  %v813_v22 = vpack.c.bf16 %v293_v16, %v292_v15  ;;  %v316_v24 = vrot.slane %v269_v51, %v315_v19 }
  0x2f   : > { %798 = vmatpush3.bf16.msra.mxu0 %v1125_v32  ;;  %830 = vmatpush3.bf16.msra.mxu1 %v1125_v32  ;;  %v405_v63 = vrot.slane %v273_v59, %v319_v47  ;;  %v401_v25 = vrot.slane %v273_v59, %v315_v19 }
  0x30   : > { %800 = vmatprep.subr.bf16.mxu0 %v1135_v38  ;;  %832 = vmatprep.subr.bf16.mxu1 %v1135_v38  ;;  %v277_v23 = vadd.f32 %v276_v18, %v263_v17 }
  0x31   : > { %387 = vmatprep.mubr.f32.mxu0 %v320_v58  ;;  %472 = vmatprep.mubr.f32.mxu1 %v405_v63 }
  0x32   : > { %v490_v26 = vrot.slane %v277_v23, %v319_v47 }
  0x33   : > { %802 = vmatpush3.bf16.msra.mxu0 %v1155_v50  ;;  %834 = vmatpush3.bf16.msra.mxu1 %v1155_v50 }
  0x34   : > { %804 = vmatprep.subr.bf16.mxu0 %v803_v53  ;;  %836 = vmatprep.subr.bf16.mxu1 %v803_v53 }
  0x37   : > { %806 = vmatpush3.bf16.msra.mxu0 %v805_v62  ;;  %838 = vmatpush3.bf16.msra.mxu1 %v805_v62 }
  0x38   : > { %808 = vmatprep.subr.bf16.mxu0 %v807_v0  ;;  %840 = vmatprep.subr.bf16.mxu1 %v807_v0 }
  0x3b   : > { %810 = vmatpush3.bf16.msra.mxu0 %v809_v11  ;;  %842 = vmatpush3.bf16.msra.mxu1 %v809_v11 }
  0x3c   : > { %812 = vmatprep.subr.bf16.mxu0 %v811_v12  ;;  %844 = vmatprep.subr.bf16.mxu1 %v811_v12 }
  0x3f   : > { %814 = vmatpush3.bf16.msra.mxu0 %v813_v22  ;;  %846 = vmatpush3.bf16.msra.mxu1 %v813_v22 }
  0x40   : > { %848 = vmatprep.subr.bf16.mxu0 %v1037_v3  ;;  %v486_v3 = vrot.slane %v277_v23, %v315_v19 }
  0x42   : > { %388 = vmatmul.mubr.f32.vlgmr.msra.gmra.mrb[0].mxu0 %v316_v24  ;;  %473 = vmatmul.mubr.f32.vlgmr.msra.gmra.mrb[0].mxu1 %v401_v25 }
  0x43   : > { %850 = vmatpush3.bf16.msra.mxu0 %v1048_v7  ;;  %557 = vmatprep.mubr.f32.mxu0 %v490_v26 }
  0x44   : > { %852 = vmatprep.subr.bf16.mxu0 %v1050_v8  ;;  %v311_v8 = vstv %s310_s25 }
  0x47   : > { %854 = vmatpush3.bf16.msra.mxu0 %v1070_v13 }
  0x48   : > { %856 = vmatprep.subr.bf16.mxu0 %v1075_v14 }
  0x4b   : > { %858 = vmatpush3.bf16.msra.mxu0 %v1094_v20 }
  0x4c   : > { %860 = vmatprep.subr.bf16.mxu0 %v1098_v21  ;;  %v396_v21 = vstv %s672_s26 }
  0x4f   : > { %862 = vmatpush3.bf16.msra.mxu0 %v1125_v32  ;;  %v481_v32 = vstv %s674_s5 }
  0x50   : > { %864 = vmatprep.subr.bf16.mxu0 %v1135_v38 }
  0x53   : > { %866 = vmatpush3.bf16.msra.mxu0 %v1155_v50 }
  0x54   : > { %868 = vmatprep.subr.bf16.mxu0 %v803_v53 }
  0x57   : > { %870 = vmatpush3.bf16.msra.mxu0 %v805_v62 }
  0x58   : > { %872 = vmatprep.subr.bf16.mxu0 %v807_v0 }
  0x5b   : > { %874 = vmatpush3.bf16.msra.mxu0 %v809_v11 }
  0x5c   : > { %876 = vmatprep.subr.bf16.mxu0 %v811_v12 }
  0x5f   : > { %878 = vmatpush3.bf16.msra.mxu0 %v813_v22 }
  0x62   : > { %558 = vmatmul.mubr.f32.vlgmr.msra.gmra.mrb[2].mxu0 %v486_v3 }
 0x115   : > { %v710_v7 = vpop.f32.mrb[0].mxu0  ;;  %v745_v14 = vpop.f32.mrb[0].mxu1 }
 0x116   : > { %v711_v13 = vpop.f32.mrb[1].mxu0  ;;  %v746_v27 = vpop.f32.mrb[1].mxu1 }
 0x117   : > { %v712_v20 = vadd.f32 %v711_v13, %v710_v7  ;;  %v747_v28 = vadd.f32 %v746_v27, %v745_v14 }
 0x119   : > { %v390_v29 = vadd.f32 %v712_v20, %v311_v8  ;;  %v475_v30 = vadd.f32 %v747_v28, %v396_v21 }
 0x11b   : > { %394 = vst.msk [vmem:[%s240_s30] sm:$0x1] %vm393_vm0, %v390_v29  ;;  %673 = vst.msk [vmem:[%s240_s30 + $0x1] sm:$0x1] %vm393_vm0, %v475_v30 }
 0x135   : > { %v780_v31 = vpop.f32.mrb[2].mxu0 }
 0x136   : > { %v781_v33 = vpop.f32.mrb[3].mxu0 }
 0x137   : > { %v782_v34 = vadd.f32 %v781_v33, %v780_v31 }
 0x139   : > { %v560_v35 = vadd.f32 %v782_v34, %v481_v32 }
 0x13b   : > { %675 = vst.msk [vmem:[%s240_s30 + $0x2] sm:$0x1] %vm393_vm0, %v560_v35 }
 0x13c PF: > { %s15_s17 = sadd.s32 1, %s957_s17   ;;  %s1232_s15 = smov %s953_s16 }
 0x13d   : > { %p12_p2 = scmp.ge.s32.totalorder %s15_s17, 4   ;;  %s1233_s16 = smov %s1235_s19 }
 0x13f   :  { %14 = sbr.rel (!%p12_p2) target bundleno = 2 (0x2), region = 83 }
 0x146   :  { %590 = vsyncpa [#allocation3], 1 }
 0x147   :  { %592 = vsyncpa [#allocation3 + $0x1], 1 }

</bundles_post_ra>
